<compile_context>
chip_gen: v7x
topology: tpu7x:2x2x1
jax: 0.10.0
libtpu: 0.0.40
codegen_flags: <defaults>
</compile_context>

<pallas_src>
import functools

import jax
import jax.numpy as jnp
from jax.experimental import pallas as pl
from jax.experimental.pallas import tpu as pltpu

LANES = 128
SUBLANES = 8
MAX_BLOCK_ROWS = 4096     # (4096, 128) f32 block = 2 MiB per input
NUM_CORES = 2             # leading "parallel" axis (megacore split on v7x)


def _round_up(n, m):
    return ((n + m - 1) // m) * m


def _bce_kernel(x_ref, y_ref, o_ref, *, n_blocks, blocks_per_core,
                remaining_last, block_elems):
    c = pl.program_id(0)
    j = pl.program_id(1)
    global_blk = c * blocks_per_core + j

    # Output block index is constant over j -> it stays resident as the
    # per-core accumulator; zero it on the first inner step.
    @pl.when(j == 0)
    def _():
        o_ref[...] = jnp.zeros_like(o_ref)

    x = x_ref[...].astype(jnp.float32)
    y = y_ref[...].astype(jnp.float32)
    # Numerically stable BCE-with-logits (matches torch.nn.BCEWithLogitsLoss).
    loss = jnp.maximum(x, 0.0) - x * y + jnp.log1p(jnp.exp(-jnp.abs(x)))

    def fold(block):
        # Sublane/lane-preserving fold into the (8, 128) accumulator: the
        # reshape groups whole vregs, so the reduce is plain VPU adds.
        o_ref[...] += block.reshape(-1, SUBLANES, LANES).sum(axis=0)

    # Static (trace-time) structure: drop the mask / overhang branches when
    # the element count tiles evenly over the grid.
    full_tail = (remaining_last == block_elems)
    no_overhang = (NUM_CORES * blocks_per_core == n_blocks)

    if full_tail and no_overhang:
        fold(loss)
    else:
        # All blocks except the last valid one are fully valid.
        @pl.when(global_blk < n_blocks - 1)
        def _():
            fold(loss)

        # Last valid block: mask the tail (lane-alignment pad / partial-block
        # rows read past the end of the input slab).
        @pl.when(global_blk == n_blocks - 1)
        def _():
            if full_tail:
                fold(loss)
            else:
                rows, cols = loss.shape
                row_idx = jax.lax.broadcasted_iota(jnp.int32, (rows, cols), 0)
                col_idx = jax.lax.broadcasted_iota(jnp.int32, (rows, cols), 1)
                local_idx = row_idx * cols + col_idx
                fold(jnp.where(local_idx < remaining_last, loss, 0.0))

        # Blocks with global_blk >= n_blocks (the clamped overhang block on the
        # second core when the block count is odd) contribute nothing.


def bce_with_logits_loss(x, y):
    """Mean-reduced BCEWithLogitsLoss over all elements (weight=None)."""
    # TODO(synk): optional per-element `weight` (module default is None) not wired in.
    assert x.shape == y.shape
    n_valid = x.size

    # Flatten row-major in the NATIVE dtype (reshape is layout-free; no upcast).
    x_flat = jnp.ravel(x)
    y_flat = jnp.ravel(y)
    pad = (-n_valid) % LANES
    if pad:  # tiny (<128 elem) pad, only when not lane-aligned
        x_flat = jnp.pad(x_flat, (0, pad))
        y_flat = jnp.pad(y_flat, (0, pad))
    rows = (n_valid + pad) // LANES
    x2 = x_flat.reshape(rows, LANES)
    y2 = y_flat.reshape(rows, LANES)

    # Large blocks to amortize per-grid-step overhead; shrink to fit tiny inputs.
    block_rows = min(MAX_BLOCK_ROWS, _round_up(rows, SUBLANES))
    block_elems = block_rows * LANES
    n_blocks = pl.cdiv(rows, block_rows)
    blocks_per_core = pl.cdiv(n_blocks, NUM_CORES)
    # Number of valid (unpadded) elements in the last block (static Python int).
    remaining_last = n_valid - (n_blocks - 1) * block_elems

    def in_map(c, j):
        # Clamp so the (at most one) overhang block re-reads a valid block
        # instead of DMA-ing out of bounds; the kernel skips its contribution.
        return (jnp.minimum(c * blocks_per_core + j, n_blocks - 1), 0)

    kernel = functools.partial(
        _bce_kernel,
        n_blocks=n_blocks,
        blocks_per_core=blocks_per_core,
        remaining_last=remaining_last,
        block_elems=block_elems,
    )

    partials = pl.pallas_call(
        kernel,
        out_shape=jax.ShapeDtypeStruct((NUM_CORES * SUBLANES, LANES),
                                       jnp.float32),
        grid_spec=pltpu.PrefetchScalarGridSpec(
            num_scalar_prefetch=0,
            grid=(NUM_CORES, blocks_per_core),
            in_specs=[
                pl.BlockSpec((block_rows, LANES), in_map),
                pl.BlockSpec((block_rows, LANES), in_map),
            ],
            out_specs=pl.BlockSpec((SUBLANES, LANES), lambda c, j: (c, 0)),
        ),
        compiler_params=pltpu.CompilerParams(
            dimension_semantics=("parallel", "arbitrary"),
            vmem_limit_bytes=32 << 20,   # safe on v5e/v6e/v7x; covers 8 MiB of buffers
        ),
    )(x2, y2)

    # Tiny (16, 128) final reduce + mean outside the kernel.
    return jnp.sum(partials) / jnp.float32(n_valid)


def _reference(x, y):
    x = x.astype(jnp.float32)
    y = y.astype(jnp.float32)
    loss = jnp.maximum(x, 0.0) - x * y + jnp.log1p(jnp.exp(-jnp.abs(x)))
    return jnp.mean(loss)


if __name__ == "__main__":
    key = jax.random.PRNGKey(0)
    kx, ky = jax.random.split(key)
    # Small NCHW shapes: batch=2, channels=4, spatial=16x16.
    x = jax.random.normal(kx, (2, 4, 16, 16), dtype=jnp.float32)
    y = (jax.random.uniform(ky, (2, 4, 16, 16)) > 0.5).astype(jnp.float32)

    out = bce_with_logits_loss(x, y)
    jax.block_until_ready(out)
    ref = _reference(x, y)
    assert jnp.allclose(out, ref, atol=1e-5, rtol=1e-5), (out, ref)

    # Secondary check: non-lane-aligned element count exercises the masked tail.
    kx2, ky2 = jax.random.split(ky)
    x2 = jax.random.normal(kx2, (3, 5, 7), dtype=jnp.float32)
    y2 = (jax.random.uniform(ky2, (3, 5, 7)) > 0.5).astype(jnp.float32)
    out2 = bce_with_logits_loss(x2, y2)
    jax.block_until_ready(out2)
    ref2 = _reference(x2, y2)
    assert jnp.allclose(out2, ref2, atol=1e-5, rtol=1e-5), (out2, ref2)

    print("KERNEL_OK")
</pallas_src>

<mosaic_0001>
module attributes {stable_mosaic.version = 11 : i64} {
  func.func @_bce_kernel(%arg0: i32, %arg1: i32, %arg2: memref<16x128xf32, #tpu.memory_space<vmem>>, %arg3: memref<16x128xf32, #tpu.memory_space<vmem>>, %arg4: memref<8x128xf32, #tpu.memory_space<vmem>>) attributes {dimension_semantics = [#tpu.dimension_semantics<parallel>, #tpu.dimension_semantics<arbitrary>], iteration_bounds = array<i64: 2, 1>, scalar_prefetch = 0 : i64, scratch_operands = 0 : i64, tpu.core_type = #tpu.core_type<tc>, window_params = [{transform_indices = @transform_0, window_bounds = array<i64: 16, 128>}, {transform_indices = @transform_1, window_bounds = array<i64: 16, 128>}, {transform_indices = @transform_2, window_bounds = array<i64: 8, 128>}]} {
    %c1_i32 = arith.constant 1 : i32
    %0 = arith.muli %arg0, %c1_i32 : i32
    %1 = arith.addi %0, %arg1 : i32
    %c0_i32 = arith.constant 0 : i32
    %2 = arith.cmpi eq, %arg1, %c0_i32 : i32
    %3 = arith.extui %2 : i1 to i32
    %c0_i32_0 = arith.constant 0 : i32
    %4 = arith.cmpi ne, %3, %c0_i32_0 : i32
    scf.if %4 {
      %cst_9 = arith.constant 0.000000e+00 : f32
      %23 = vector.broadcast %cst_9 : f32 to vector<8x128xf32>
      %c0_10 = arith.constant 0 : index
      %c0_11 = arith.constant 0 : index
      %24 = vector.load %arg4[%c0_10, %c0_11] : memref<8x128xf32, #tpu.memory_space<vmem>>, vector<8x128xf32>
      tpu.vector_store %arg4[%c0_10, %c0_11], %23 {strides = array<i32>} : memref<8x128xf32, #tpu.memory_space<vmem>>, vector<8x128xf32>,
    } else {
    }
    %c0 = arith.constant 0 : index
    %c0_1 = arith.constant 0 : index
    %5 = vector.load %arg2[%c0, %c0_1] : memref<16x128xf32, #tpu.memory_space<vmem>>, vector<16x128xf32>
    %c0_2 = arith.constant 0 : index
    %c0_3 = arith.constant 0 : index
    %6 = vector.load %arg3[%c0_2, %c0_3] : memref<16x128xf32, #tpu.memory_space<vmem>>, vector<16x128xf32>
    %cst = arith.constant 0.000000e+00 : f32
    %7 = vector.broadcast %cst : f32 to vector<16x128xf32>
    %8 = arith.maximumf %5, %7 : vector<16x128xf32>
    %9 = arith.mulf %5, %6 : vector<16x128xf32>
    %10 = arith.subf %8, %9 : vector<16x128xf32>
    %11 = math.absf %5 : vector<16x128xf32>
    %cst_4 = arith.constant 0.000000e+00 : f32
    %12 = vector.broadcast %cst_4 : f32 to vector<16x128xf32>
    %13 = arith.subf %12, %11 : vector<16x128xf32>
    %14 = math.exp %13 : vector<16x128xf32>
    %15 = math.log1p %14 : vector<16x128xf32>
    %16 = arith.addf %10, %15 : vector<16x128xf32>
    %c0_i32_5 = arith.constant 0 : i32
    %17 = arith.cmpi slt, %1, %c0_i32_5 : i32
    %18 = arith.extui %17 : i1 to i32
    %c0_i32_6 = arith.constant 0 : i32
    %19 = arith.cmpi ne, %18, %c0_i32_6 : i32
    scf.if %19 {
      %c0_9 = arith.constant 0 : index
      %c0_10 = arith.constant 0 : index
      %23 = vector.load %arg4[%c0_9, %c0_10] : memref<8x128xf32, #tpu.memory_space<vmem>>, vector<8x128xf32>
      %24 = vector.shape_cast %16 : vector<16x128xf32> to vector<2x8x128xf32>
      %cst_11 = arith.constant dense<0.000000e+00> : vector<8x128xf32>
      %25 = vector.multi_reduction <add>, %24, %cst_11 [0] : vector<2x8x128xf32> to vector<8x128xf32>
      %26 = arith.addf %23, %25 : vector<8x128xf32>
      %c0_12 = arith.constant 0 : index
      %c0_13 = arith.constant 0 : index
      %27 = vector.load %arg4[%c0_12, %c0_13] : memref<8x128xf32, #tpu.memory_space<vmem>>, vector<8x128xf32>
      tpu.vector_store %arg4[%c0_12, %c0_13], %26 {strides = array<i32>} : memref<8x128xf32, #tpu.memory_space<vmem>>, vector<8x128xf32>,
    } else {
    }
    %c0_i32_7 = arith.constant 0 : i32
    %20 = arith.cmpi eq, %1, %c0_i32_7 : i32
    %21 = arith.extui %20 : i1 to i32
    %c0_i32_8 = arith.constant 0 : i32
    %22 = arith.cmpi ne, %21, %c0_i32_8 : i32
    scf.if %22 {
      %c0_9 = arith.constant 0 : index
      %c0_10 = arith.constant 0 : index
      %23 = vector.load %arg4[%c0_9, %c0_10] : memref<8x128xf32, #tpu.memory_space<vmem>>, vector<8x128xf32>
      %24 = vector.shape_cast %16 : vector<16x128xf32> to vector<2x8x128xf32>
      %cst_11 = arith.constant dense<0.000000e+00> : vector<8x128xf32>
      %25 = vector.multi_reduction <add>, %24, %cst_11 [0] : vector<2x8x128xf32> to vector<8x128xf32>
      %26 = arith.addf %23, %25 : vector<8x128xf32>
      %c0_12 = arith.constant 0 : index
      %c0_13 = arith.constant 0 : index
      %27 = vector.load %arg4[%c0_12, %c0_13] : memref<8x128xf32, #tpu.memory_space<vmem>>, vector<8x128xf32>
      tpu.vector_store %arg4[%c0_12, %c0_13], %26 {strides = array<i32>} : memref<8x128xf32, #tpu.memory_space<vmem>>, vector<8x128xf32>,
    } else {
    }
    return
  }
  func.func @transform_0(%arg0: i32, %arg1: i32) -> (i32, i32) {
    %c1_i32 = arith.constant 1 : i32
    %0 = arith.muli %arg0, %c1_i32 : i32
    %1 = arith.addi %0, %arg1 : i32
    %c0_i32 = arith.constant 0 : i32
    %2 = arith.minsi %1, %c0_i32 : i32
    %c0_i32_0 = arith.constant 0 : i32
    %c0_i32_1 = arith.constant 0 : i32
    return %2, %c0_i32_0 : i32, i32
  }
  func.func @transform_1(%arg0: i32, %arg1: i32) -> (i32, i32) {
    %c1_i32 = arith.constant 1 : i32
    %0 = arith.muli %arg0, %c1_i32 : i32
    %1 = arith.addi %0, %arg1 : i32
    %c0_i32 = arith.constant 0 : i32
    %2 = arith.minsi %1, %c0_i32 : i32
    %c0_i32_0 = arith.constant 0 : i32
    %c0_i32_1 = arith.constant 0 : i32
    return %2, %c0_i32_0 : i32, i32
  }
  func.func @transform_2(%arg0: i32, %arg1: i32) -> (i32, i32) {
    %c0_i32 = arith.constant 0 : i32
    %c0_i32_0 = arith.constant 0 : i32
    return %arg0, %c0_i32 : i32, i32
  }
}

</mosaic_0001>

<bundles_post_ra>
// kernel: tpu_custom_call.1
= control target key start
LH: loop header
LB: loop body
LE: loop exit
PB: predicated region body
PF: predicated region fallthrough
CT: control target
= control target key end

     0   :  { %7 = vsyncpa [#allocation3], 0  ;;  %s940_s0 = inlined_call_operand.hbm [shape: f32[16,128], index: 0, kind: input, shape index: {}]   ;;  %s941_s1 = inlined_call_operand.hbm [shape: f32[16,128], index: 1, kind: input, shape index: {}]   ;;  %s942_s2 = inlined_call_operand.hbm [shape: f32[16,128], index: 2, kind: output, shape index: {}]  }
   0x1   :  { %9 = vsyncpa [#allocation3 + $0x1], 0 }
   0x2   :  { %10 = vsyncpa [#allocation6], 0 }
   0x3   :  { %12 = vsyncpa [#allocation6 + $0x1], 0 }
   0x4   :  { %13 = vsyncpa [#allocation4], 0 }
   0x5   :  { %15 = vsyncpa [#allocation4 + $0x1], 0  ;;  %s729_s9 = smov 0   ;;  %s731_s10 = smov 0  }
   0x6   :  { %s733_s11 = smov 0   ;;  %s735_s12 = smov 0  }
   0x7   :  { %s737_s13 = smov 0   ;;  %s739_s14 = smov 0  }
   0x8   :  { %s741_s15 = smov 0   ;;  %s743_s16 = smov 0  }
   0x9 LB: > { %s415_s17 = sadd.s32 4294967295, %s706_s16   ;;  %s416_s18 = sadd.s32 4294967294, %s706_s16   ;;  %s706_s16 = sphi %s743_s16, %s21_s16   ;;  %s702_s15 = sphi %s741_s15, %s961_s15   ;;  %s698_s14 = sphi %s739_s14, %s960_s14   ;;  %s694_s13 = sphi %s737_s13, %s930_s13   ;;  %s690_s12 = sphi %s735_s12, %s959_s12   ;;  %s686_s11 = sphi %s733_s11, %s958_s11   ;;  %s682_s10 = sphi %s731_s10, %s957_s10   ;;  %s678_s9 = sphi %s729_s9, %s956_s9  }
   0xa   : > { %s33_s19 = sadd.s32 1, %s702_s15  ;;  %p675_p1 = scmp.ne.s32.totalorder %s694_s13, 0 }
   0xb   : > { %p35_p0 = scmp.ge.s32.totalorder %s33_s19, 2  ;;  %p54_p2 = scmp.eq.s32.totalorder %s706_s16, 0 }
   0xc   : > { %p59_p3 = scmp.ne.s32.totalorder %s694_s13, %s690_s12  ;;  %p60_p5 = scmp.eq.s32.totalorder %s415_s17, 0 }
   0xd   : > { %s963_s19 = smov (%p35_p0, %s33_s19), 0  ;;  %p775_p4 = por %p675_p1, %p54_p2 }
   0xe   : > { %p779_p6 = por %p60_p5, %p59_p3  ;;  %s101_s22 = ssub.s32 %s702_s15, %s963_s19 }
   0xf   : > { %p102_p7 = scmp.eq.s32.totalorder %s101_s22, 0  ;;  %s104_s23 = sadd.s32 1, %s686_s11 }
  0x10   : > { %s946_s21 = scalar_select %p779_p6, 1, 0 }
  0x11   : > { %s787_s24 = scalar_select %p102_p7, %s686_s11, %s104_s23  }
  0x12   : > { %p114_p8 = scmp.ne.s32.totalorder %s686_s11, %s682_s10  ;;  %p115_p9 = scmp.eq.s32.totalorder %s415_s17, 1 }
  0x13   : > { %p120_p10 = scmp.ne.s32.totalorder %s682_s10, %s678_s9  ;;  %p121_p11 = scmp.eq.s32.totalorder %s416_s18, 1 }
  0x14   : > { %p793_p12 = por %p115_p9, %p114_p8  ;;  %p454_p1 = scmp.lt.s32.totalorder %s706_s16, 2 }
  0x15   : > { %p798_p0 = por %p121_p11, %p120_p10  ;;  %s708_s27 = smov [#allocation2]  }
  0x16   : > { %s947_s25 = scalar_select %p793_p12, 1, 0 }
  0x17   : > { %s948_s26 = scalar_select %p798_p0, 1, 0 }
  0x18   : > { %s155_s28 = sshll.u32 %s708_s27, 4  ;;  %p805_p2 = pnand %p454_p1, %p775_p4  ;;  %s156_s28 = int_to_ptr.vmem [resolvable:$true] %s155_s28 }
  0x19   : > { %s539_s4 = scalar_lea.hbm %s940_s0, 256 }
  0x1a   : > { %p540_p3 = scmp.ne.s32.totalorder %s940_s0, %s539_s4  ;;  %p541_p5 = pneg %p805_p2 }
  0x1b   : > { %p546_p8 = scmp.lt.u32.totalorder %s539_s4, %s539_s4  ;;  %p548_p9 = scmp.lt.u32.totalorder %s539_s4, %s940_s0 }
  0x1c   : > { %p542_p7 = pnand %p541_p5, %p540_p3 }
  0x1d   : > { %p549_p10 = por %p548_p9, %p546_p8 }
  0x1e   : > { %p543_p4 = pneg %p542_p7 }
  0x20   : > { %p550_p11 = pnand %p549_p10, %p543_p4 }
  0x22   : > { %553 = shalt.err (!%p550_p11)
}
  0x23   : > { %s554_s12 = scalar_lea.vmem %s156_s28, 256  ;;  %s561_s17 = scalar_lea.vmem %s156_s28, 512 }
  0x24   : > { %p555_p1 = scmp.ne.s32.totalorder %s156_s28, %s554_s12  ;;  %p562_p12 = scmp.lt.s32.totalorder %s156_s28, %s156_s28 }
  0x25   : > { %p563_p6 = scmp.lt.s32.totalorder %s561_s17, %s554_s12 }
  0x26   : > { %p557_p13 = pnand %p555_p1, %p541_p5 }
  0x27   : > { %p564_p3 = por %p563_p6, %p562_p12 }
  0x28   : > { %p558_p0 = pneg %p557_p13 }
  0x2a   : > { %p565_p7 = pnand %p564_p3, %p558_p0 }
  0x2c   : > { %568 = shalt.err (!%p565_p7)
}
  0x2d   : > { %s709_s18 = smov 128   ;;  %s710_s20 = smov 8  }
  0x2e   : > { %446 = dma.hbm_to_vmem [thread:$0]  (!%p805_p2), %s940_s0, 256, %s156_s28, [#allocation3], %s709_s18, %s709_s18, %s710_s20  }
  0x2f   : > { %p425_p13 = scmp.ge.s32.totalorder %s706_s16, 1  ;;  %p187_p4 = scmp.lt.s32.totalorder %s706_s16, 3 }
  0x30   : > { %s711_s30 = smov [#allocation5]   ;;  %s569_s6 = scalar_lea.hbm %s941_s1, 256 }
  0x31   : > { %p836_p8 = pnand %p425_p13, %p187_p4  ;;  %s179_s3 = sshll.u32 %s711_s30, 4  ;;  %s180_s3 = int_to_ptr.vmem [resolvable:$true] %s179_s3 }
  0x32   : > { %p570_p6 = scmp.ne.s32.totalorder %s941_s1, %s569_s6  ;;  %p576_p9 = scmp.lt.u32.totalorder %s569_s6, %s569_s6 }
  0x33   : > { %s950_s27 = scalar_select %p836_p8, 1, 0 }
  0x34   : > { %p572_p12 = pnand %p570_p6, %p541_p5  ;;  %p578_p10 = scmp.lt.u32.totalorder %s569_s6, %s941_s1 }
  0x36   : > { %p573_p0 = pneg %p572_p12  ;;  %p579_p11 = por %p578_p10, %p576_p9 }
  0x38   : > { %p580_p1 = pnand %p579_p11, %p573_p0 }
  0x3a   : > { %583 = shalt.err (!%p580_p1)
}
  0x3b   : > { %s584_s17 = scalar_lea.vmem %s180_s3, 256  ;;  %s591_s22 = scalar_lea.vmem %s180_s3, 512 }
  0x3c   : > { %p585_p3 = scmp.ne.s32.totalorder %s180_s3, %s584_s17  ;;  %p592_p4 = scmp.lt.s32.totalorder %s180_s3, %s180_s3 }
  0x3d   : > { %p593_p8 = scmp.lt.s32.totalorder %s591_s22, %s584_s17 }
  0x3e   : > { %p587_p7 = pnand %p585_p3, %p541_p5 }
  0x3f   : > { %p594_p6 = por %p593_p8, %p592_p4 }
  0x40   : > { %p588_p13 = pneg %p587_p7 }
  0x42   : > { %p595_p12 = pnand %p594_p6, %p588_p13 }
  0x44   : > { %598 = shalt.err (!%p595_p12)
}
  0x45   : > { %449 = dma.hbm_to_vmem [thread:$0]  (!%p805_p2), %s941_s1, 256, %s180_s3, [#allocation6], %s709_s18, %s709_s18, %s710_s20  }
  0x46   : > { %p951_p0 = scmp.ne.s32.totalorder %s950_s27, 0 }
  0x47   : > { %s193_s4 = sand.u32 (!%p951_p0), 1, %s694_s13   ;;  %p952_p5 = scmp.ne.s32.totalorder (!%p951_p0), %s946_s21, 0 }
  0x48   : > { %191 = sbr.rel (%p951_p0) target bundleno = 159 (0x9f), region = 28  ;;  %s426_s5 = sshll.u32 (!%p951_p0), %s193_s4, 4 }
  0x49   : > { %s194_s6 = scalar_lea.sflag (!%p951_p0), [#allocation3], %s193_s4  ;;  %s197_s7 = scalar_lea.vmem (!%p951_p0), [#allocation2], %s426_s5 }
  0x4f   : > { %664 = dma.done.wait (%p952_p5), %s194_s6, 256  }
  0x50   : > { %666 = vsyncadd (%p952_p5), %s194_s6, 4294967040  ;;  %s203_s29 = scalar_lea.sflag [#allocation6], %s193_s4  ;;  %s206_s8 = scalar_lea.vmem [#allocation5], %s426_s5 }
  0x51   : > { %668 = dma.done.wait (%p952_p5), %s203_s29, 256  }
  0x52   : > { %670 = vsyncadd (%p952_p5), %s203_s29, 4294967040  ;;  %s229_s18 = sand.u32 1, %s682_s10   ;;  %v712_v0 = vmov 0.0   ;;  %v246_v1 = vld [vmem:[%s197_s7] sm:$0xff]  ;;  %v247_v2 = vld [vmem:[%s197_s7 + $0x8] sm:$0xff]  ;;  %p429_p2 = scmp.ge.s32.totalorder %s698_s14, 0 }
  0x53   : > { %s428_s20 = sshll.u32 %s229_s18, 3  ;;  %v256_v3 = vand.u32 2147483647, %v246_v1  ;;  %v257_v4 = vand.u32 2147483647, %v247_v2  ;;  %v248_v15 = vld [vmem:[%s206_s8] sm:$0xff] }
  0x54   : > { %s877_s27 = scalar_lea.vmem [#allocation7], %s428_s20  ;;  %v249_v16 = vld [vmem:[%s206_s8 + $0x8] sm:$0xff]  ;;  %v250_v18 = vmax.f32 %v246_v1, 0.0  ;;  %v252_v19 = vmul.f32 %v248_v15, %v246_v1  ;;  %v251_v22 = vmax.f32 %v247_v2, 0.0 }
  0x55   : > { %245 = vst [vmem:[%s877_s27] sm:$0xff] %v712_v0  ;;  %v258_v5 = vsub.f32 0.0, %v256_v3  ;;  %v259_v6 = vsub.f32 0.0, %v257_v4  ;;  %v253_v23 = vmul.f32 %v249_v16, %v247_v2 }
  0x56   : > { %v254_v27 = vsub.f32 %v250_v18, %v252_v19 }
  0x57   : > { %v260_v7 = vmul.f32 1.442695, %v258_v5  ;;  %v262_v8 = vmul.f32 1.442695, %v259_v6  ;;  %v255_v30 = vsub.f32 %v251_v22, %v253_v23 }
  0x59   : > { %531 = vpow2.f32 %v260_v7 }
  0x5a   : > { %533 = vpow2.f32 %v262_v8 }
  0x5c   : > { %v288_v37 = vld [vmem:[%s877_s27] sm:$0xff] (!%p429_p2) }
  0x63   : > { %v532_v9 = vpop.eup %531 }
  0x64   : > { %v534_v10 = vpop.eup %533  ;;  %v264_v11 = vadd.f32 1.0, %v532_v9  ;;  %v267_v13 = vmul.f32 -0.5, %v532_v9  ;;  %v270_v20 = vand.u32 2147483647, %v532_v9 }
  0x65   : > { %v273_v12 = vadd.f32 1.0, %v534_v10  ;;  %v276_v14 = vmul.f32 -0.5, %v534_v10  ;;  %v279_v24 = vand.u32 2147483647, %v534_v10 }
  0x66   : > { %535 = vlog2.f32 %v264_v11  ;;  %v268_v17 = vadd.f32 1.0, %v267_v13  ;;  %vm271_vm0 = vcmp.lt.f32.partialorder %v270_v20, 0.0004427343 }
  0x67   : > { %537 = vlog2.f32 %v273_v12  ;;  %v277_v21 = vadd.f32 1.0, %v276_v14  ;;  %vm280_vm1 = vcmp.lt.f32.partialorder %v279_v24, 0.0004427343 }
  0x68   : > { %v269_v25 = vmul.f32 %v532_v9, %v268_v17 }
  0x69   : > { %v278_v28 = vmul.f32 %v534_v10, %v277_v21 }
  0x6f   : > { %287 = sbr.rel (%p429_p2) target bundleno = 124 (0x7c), region = 44 }
  0x70   : > { %v536_v26 = vpop.eup %535 }
  0x71   : > { %v538_v29 = vpop.eup %537  ;;  %v266_v31 = vmul.f32 0.6931472, %v536_v26 }
  0x72   : > { %v275_v32 = vmul.f32 0.6931472, %v538_v29 }
  0x73   : > { %v272_v33 = vsel %vm271_vm0, %v269_v25, %v266_v31 }
  0x74   : > { %v281_v34 = vsel %vm280_vm1, %v278_v28, %v275_v32  ;;  %v282_v35 = vadd.f32 %v272_v33, %v254_v27 }
  0x75   : > { %v283_v36 = vadd.f32 %v281_v34, %v255_v30 }
  0x77   : > { %v289_v38 = vadd.f32 %v283_v36, %v282_v35 }
  0x79   : > { %v290_v39 = vadd.f32 %v289_v38, %v288_v37 }
  0x7b   : > { %291 = vst [vmem:[%s877_s27] sm:$0xff] %v290_v39 }
  0x7c PF: > { %p430_p8 = scmp.ne.s32.totalorder %s698_s14, 0 }
  0x7d   : > { %v297_v41 = vadd.f32 (!%p430_p8), %v283_v36, %v282_v35 }
  0x7e   : > { %295 = sbr.rel (%p430_p8) target bundleno = 134 (0x86), region = 48 }
  0x82   : > { %v296_v40 = vld [vmem:[%s877_s27] sm:$0xff] (!%p430_p8) }
  0x83   : > { %v298_v42 = vadd.f32 (!%p430_p8), %v297_v41, %v296_v40 }
  0x85   : > { %299 = vst [vmem:[%s877_s27] sm:$0xff] %v298_v42 }
  0x86 PF: > { %s432_s21 = sshll.u32 %s698_s14, 7  ;;  %s314_s17 = sshll.u32 %s877_s27, 4  ;;  %s315_s17 = int_to_ptr.vmem [resolvable:$true] %s314_s17 }
  0x87   : > { %s890_s12 = scalar_lea.hbm %s942_s2, %s432_s21  ;;  %s301_s22 = scalar_lea.sflag [#allocation4], %s229_s18 }
  0x88   : > { %s599_s23 = scalar_lea.vmem %s315_s17, 128  ;;  %p953_p10 = scmp.ne.s32.totalorder %s947_s25, 0 }
  0x89   : > { %p600_p9 = scmp.ne.s32.totalorder %s315_s17, %s599_s23  ;;  %s713_s30 = smov [#allocation7]  }
  0x8a   : > { %s603_s4 = sshll.u32 %s713_s30, 4  ;;  %s604_s4 = int_to_ptr.vmem [resolvable:$false] %s603_s4 }
  0x8b   : > { %p601_p11 = pnand %p600_p9, %p953_p10  ;;  %s605_s5 = scalar_lea.vmem %s604_s4, 256 }
  0x8c   : > { %p606_p3 = scmp.lt.s32.totalorder %s315_s17, %s604_s4  ;;  %p607_p7 = scmp.lt.s32.totalorder %s605_s5, %s599_s23 }
  0x8d   : > { %p602_p1 = pneg %p601_p11 }
  0x8e   : > { %p608_p13 = por %p607_p7, %p606_p3 }
  0x90   : > { %p609_p4 = pnand %p608_p13, %p602_p1 }
  0x92   : > { %612 = shalt.err (!%p609_p4)
}
  0x93   : > { %s613_s14 = scalar_lea.hbm %s890_s12, 128  ;;  %s617_s29 = scalar_lea.hbm %s942_s2, 256 }
  0x94   : > { %p614_p6 = scmp.ne.s32.totalorder %s890_s12, %s613_s14  ;;  %p618_p5 = scmp.lt.u32.totalorder %s890_s12, %s942_s2 }
  0x95   : > { %p619_p2 = scmp.lt.u32.totalorder %s617_s29, %s613_s14  ;;  %p621_p9 = scmp.lt.u32.totalorder %s613_s14, %s890_s12 }
  0x96   : > { %p615_p12 = pnand %p614_p6, %p953_p10 }
  0x97   : > { %p620_p8 = por %p619_p2, %p618_p5 }
  0x98   : > { %p616_p0 = pneg %p615_p12 }
  0x99   : > { %p622_p11 = por %p621_p9, %p620_p8 }
  0x9b   : > { %p623_p1 = pnand %p622_p11, %p616_p0 }
  0x9d   : > { %626 = shalt.err (!%p623_p1)
}
  0x9e   : > { %441 = dma.vmem_to_hbm [thread:$0]  (%p953_p10), %s315_s17, 128, %s890_s12, %s301_s22  }
  0x9f PF: > { %s326_s20 = sand.u32 1, %s678_s9   ;;  %p954_p3 = scmp.ne.s32.totalorder %s948_s26, 0 }
  0xa0   : > { %p955_p7 = scmp.ge.s32.totalorder %s706_s16, 2  ;;  %s327_s27 = scalar_lea.sflag [#allocation4], %s326_s20 }
  0xa2   : > { %p451_p13 = pnand %p955_p7, %p954_p3 }
  0xa4   : > { %672 = dma.done.wait (!%p451_p13), %s327_s27, 128  }
  0xa5   : > { %674 = vsyncadd (!%p451_p13), %s327_s27, 4294967168  ;;  %s21_s16 = sadd.s32 1, %s706_s16   ;;  %s956_s9 = smov %s682_s10 }
  0xa6   : > { %p18_p4 = scmp.ge.s32.totalorder %s21_s16, 4   ;;  %s957_s10 = smov %s686_s11 }
  0xa7   : > { %s958_s11 = smov %s787_s24  ;;  %s959_s12 = smov %s694_s13 }
  0xa8   : > { %s930_s13 = smov 0   ;;  %s960_s14 = smov %s702_s15 }
  0xa9   : > { %s961_s15 = smov %s963_s19  ;;  %20 = sbr.rel (!%p18_p4) target bundleno = 9 (0x9), region = 98 }
  0xb0   :  { %332 = vsyncpa [#allocation3], 1 }
  0xb1   :  { %334 = vsyncpa [#allocation3 + $0x1], 1 }
  0xb2   :  { %335 = vsyncpa [#allocation6], 1 }
  0xb3   :  { %337 = vsyncpa [#allocation6 + $0x1], 1 }
  0xb4   :  { %338 = vsyncpa [#allocation4], 1 }
  0xb5   :  { %340 = vsyncpa [#allocation4 + $0x1], 1 }

</bundles_post_ra>
